<compile_context>
chip_gen: v7x
topology: tpu7x:2x2x1
jax: 0.10.0
libtpu: 0.0.40
codegen_flags: <defaults>
</compile_context>

<pallas_src>
import functools

import jax
import jax.numpy as jnp
from jax.experimental import pallas as pl
from jax.experimental.pallas import tpu as pltpu

# Padded ("lane friendly") layer sizes.  Logical sizes are 500 / 300 / 2.
_H1 = 512     # 500 -> 512
_H2 = 384     # 300 -> 384
_OUT = 128    # 2   -> 128 (lane-dense output stores)


def _round_up(x, m):
    return ((x + m - 1) // m) * m


def _mlp_kernel(x_ref, w1_ref, b1_ref, w2_ref, b2_ref, w3_ref, b3_ref, o_ref):
    """One batch tile through the 3-layer MLP.  All matmuls accumulate in f32."""
    x = x_ref[...]
    h1 = jnp.dot(x, w1_ref[...], preferred_element_type=jnp.float32) + b1_ref[...]
    h1 = jnp.maximum(h1, 0.0)                                          # ReLU (f32)
    h2 = (
        jnp.dot(h1.astype(w2_ref.dtype), w2_ref[...],
                preferred_element_type=jnp.float32)
        + b2_ref[...]
    )
    h2 = jnp.maximum(h2, 0.0)                                          # ReLU (f32)
    o_ref[...] = (
        jnp.dot(h2.astype(w3_ref.dtype), w3_ref[...],
                preferred_element_type=jnp.float32)
        + b3_ref[...]
    ).astype(o_ref.dtype)


def _pad2(a, shape):
    """Zero-pad a 2-D array up to `shape` (exact zeros -> padded cols stay inert)."""
    out = jnp.zeros(shape, a.dtype)
    return out.at[: a.shape[0], : a.shape[1]].set(a)


@functools.partial(jax.jit, static_argnames=("block_rows", "compute_dtype"))
def net_forward(x, params, *, block_rows=1024, compute_dtype=jnp.float32):
    """Run the 3-layer MLP forward pass as a single batch-tiled Pallas kernel.

    compute_dtype=jnp.bfloat16 feeds the MXU bf16 inputs (recommended on
    v6e/v7x); accumulation is always f32.
    """
    w1, b1, w2, b2, w3, b3 = params
    batch, n_feature = x.shape
    out_logical = w3.shape[1]          # 2

    # ---- pad parameters once (wrapper side, traced/jitted away) -------------
    w1p = _pad2(w1, (n_feature, _H1)).astype(compute_dtype)
    b1p = _pad2(b1, (1, _H1)).astype(jnp.float32)
    w2p = _pad2(w2, (_H1, _H2)).astype(compute_dtype)
    b2p = _pad2(b2, (1, _H2)).astype(jnp.float32)
    w3p = _pad2(w3, (_H2, _OUT)).astype(compute_dtype)
    b3p = _pad2(b3, (1, _OUT)).astype(jnp.float32)

    # ---- choose batch tile & pad the batch to a multiple of it --------------
    tb = min(block_rows, _round_up(batch, 8))          # sublane-aligned tile
    padded_batch = _round_up(batch, tb)
    xp = x
    if padded_batch != batch:
        xp = jnp.zeros((padded_batch, n_feature), x.dtype).at[:batch].set(x)
    xp = xp.astype(compute_dtype)

    grid = (padded_batch // tb,)
    const = lambda i: (0, 0)            # weights: same block every grid step

    itemsize = jnp.dtype(compute_dtype).itemsize
    weight_elems = n_feature * _H1 + _H1 * _H2 + _H2 * _OUT
    cost = pl.CostEstimate(
        flops=2 * padded_batch * (n_feature * _H1 + _H1 * _H2 + _H2 * _OUT),
        transcendentals=0,
        bytes_accessed=(padded_batch * n_feature * itemsize       # x in
                        + padded_batch * _OUT * 4                 # out (f32)
                        + weight_elems * itemsize                 # weights
                        + (_H1 + _H2 + _OUT) * 4),                # biases
    )

    out = pl.pallas_call(
        _mlp_kernel,
        out_shape=jax.ShapeDtypeStruct((padded_batch, _OUT), jnp.float32),
        grid=grid,
        in_specs=[
            pl.BlockSpec((tb, n_feature), lambda i: (i, 0)),   # x: tiled over batch
            pl.BlockSpec((n_feature, _H1), const),             # w1 (resident)
            pl.BlockSpec((1, _H1), const),                     # b1
            pl.BlockSpec((_H1, _H2), const),                   # w2
            pl.BlockSpec((1, _H2), const),                     # b2
            pl.BlockSpec((_H2, _OUT), const),                  # w3
            pl.BlockSpec((1, _OUT), const),                    # b3
        ],
        out_specs=pl.BlockSpec((tb, _OUT), lambda i: (i, 0)),
        compiler_params=pltpu.CompilerParams(
            dimension_semantics=("parallel",),                 # shards across TCs on v7x
        ),
        cost_estimate=cost,
    )(xp, w1p, b1p, w2p, b2p, w3p, b3p)

    # Drop batch padding and the zero logit columns.
    return out[:batch, :out_logical]


def init_params(key, n_feature):
    """Deterministic PyTorch-style (uniform +-1/sqrt(fan_in)) initialization.

    Weights stored as [in_features, out_features] so y = x @ W + b.
    """
    dims = [(n_feature, 500), (500, 300), (300, 2)]
    params = []
    keys = jax.random.split(key, 2 * len(dims))
    for i, (fan_in, fan_out) in enumerate(dims):
        bound = 1.0 / jnp.sqrt(jnp.float32(fan_in))
        w = jax.random.uniform(keys[2 * i], (fan_in, fan_out), jnp.float32, -bound, bound)
        b = jax.random.uniform(keys[2 * i + 1], (1, fan_out), jnp.float32, -bound, bound)
        params += [w, b]
    return tuple(params)


def _reference_forward(x, params):
    w1, b1, w2, b2, w3, b3 = params
    h1 = jnp.maximum(x @ w1 + b1, 0.0)
    h2 = jnp.maximum(h1 @ w2 + b2, 0.0)
    return h2 @ w3 + b3


if __name__ == "__main__":
    key = jax.random.PRNGKey(0)
    k_x, k_p = jax.random.split(key)

    batch = 37          # deliberately not tile-aligned: exercises batch padding
    n_feature = 14      # Adult dataset feature count

    x = jax.random.normal(k_x, (batch, n_feature), jnp.float32)
    params = init_params(k_p, n_feature)
    ref = _reference_forward(x, params)

    # f32 compute path (default): tight tolerance.
    out = jax.block_until_ready(net_forward(x, params))
    assert out.shape == (batch, 2)
    assert jnp.allclose(out, ref, atol=1e-4, rtol=1e-4), "f32 mismatch vs reference"

    # bf16 MXU path (v6e/v7x recommendation): f32 accumulation, looser tolerance.
    out_bf16 = jax.block_until_ready(
        net_forward(x, params, compute_dtype=jnp.bfloat16)
    )
    assert out_bf16.shape == (batch, 2)
    assert jnp.allclose(out_bf16, ref, atol=1e-1, rtol=1e-1), "bf16 mismatch vs reference"

    print("KERNEL_OK")
</pallas_src>

<mosaic_0001>
module attributes {stable_mosaic.version = 11 : i64} {
  func.func @_mlp_kernel(%arg0: i32, %arg1: memref<40x14xf32, #tpu.memory_space<vmem>>, %arg2: memref<14x512xf32, #tpu.memory_space<vmem>>, %arg3: memref<1x512xf32, #tpu.memory_space<vmem>>, %arg4: memref<512x384xf32, #tpu.memory_space<vmem>>, %arg5: memref<1x384xf32, #tpu.memory_space<vmem>>, %arg6: memref<384x128xf32, #tpu.memory_space<vmem>>, %arg7: memref<1x128xf32, #tpu.memory_space<vmem>>, %arg8: memref<40x128xf32, #tpu.memory_space<vmem>>) attributes {dimension_semantics = [#tpu.dimension_semantics<parallel>], iteration_bounds = array<i64: 1>, scalar_prefetch = 0 : i64, scratch_operands = 0 : i64, tpu.core_type = #tpu.core_type<tc>, window_params = [{transform_indices = @transform_0, window_bounds = array<i64: 40, 14>}, {pipeline_mode = #tpu.pipeline_mode<synchronous>, transform_indices = @transform_1, window_bounds = array<i64: 14, 512>}, {pipeline_mode = #tpu.pipeline_mode<synchronous>, transform_indices = @transform_2, window_bounds = array<i64: 1, 512>}, {pipeline_mode = #tpu.pipeline_mode<synchronous>, transform_indices = @transform_3, window_bounds = array<i64: 512, 384>}, {pipeline_mode = #tpu.pipeline_mode<synchronous>, transform_indices = @transform_4, window_bounds = array<i64: 1, 384>}, {pipeline_mode = #tpu.pipeline_mode<synchronous>, transform_indices = @transform_5, window_bounds = array<i64: 384, 128>}, {pipeline_mode = #tpu.pipeline_mode<synchronous>, transform_indices = @transform_6, window_bounds = array<i64: 1, 128>}, {transform_indices = @transform_7, window_bounds = array<i64: 40, 128>}]} {
    %c0 = arith.constant 0 : index
    %c0_0 = arith.constant 0 : index
    %0 = vector.load %arg1[%c0, %c0_0] : memref<40x14xf32, #tpu.memory_space<vmem>>, vector<40x14xf32>
    %c0_1 = arith.constant 0 : index
    %c0_2 = arith.constant 0 : index
    %1 = vector.load %arg2[%c0_1, %c0_2] : memref<14x512xf32, #tpu.memory_space<vmem>>, vector<14x512xf32>
    %cst = arith.constant dense<0.000000e+00> : vector<40x512xf32>
    %2 = tpu.matmul %0, %1, %cst {dimension_numbers = #tpu.dot_dimension_numbers<[1], [0], [0], [1], [0, 0, 1, 1], [], []>} : vector<40x14xf32>, vector<14x512xf32>, vector<40x512xf32> -> vector<40x512xf32>
    %c0_3 = arith.constant 0 : index
    %c0_4 = arith.constant 0 : index
    %3 = vector.load %arg3[%c0_3, %c0_4] : memref<1x512xf32, #tpu.memory_space<vmem>>, vector<1x512xf32>
    %4 = vector.broadcast %3 : vector<1x512xf32> to vector<40x512xf32>
    %5 = arith.addf %2, %4 : vector<40x512xf32>
    %cst_5 = arith.constant 0.000000e+00 : f32
    %6 = vector.broadcast %cst_5 : f32 to vector<40x512xf32>
    %7 = arith.maximumf %5, %6 : vector<40x512xf32>
    %c0_6 = arith.constant 0 : index
    %c0_7 = arith.constant 0 : index
    %8 = vector.load %arg4[%c0_6, %c0_7] : memref<512x384xf32, #tpu.memory_space<vmem>>, vector<512x384xf32>
    %cst_8 = arith.constant dense<0.000000e+00> : vector<40x384xf32>
    %9 = tpu.matmul %7, %8, %cst_8 {dimension_numbers = #tpu.dot_dimension_numbers<[1], [0], [0], [1], [0, 0, 1, 1], [], []>} : vector<40x512xf32>, vector<512x384xf32>, vector<40x384xf32> -> vector<40x384xf32>
    %c0_9 = arith.constant 0 : index
    %c0_10 = arith.constant 0 : index
    %10 = vector.load %arg5[%c0_9, %c0_10] : memref<1x384xf32, #tpu.memory_space<vmem>>, vector<1x384xf32>
    %11 = vector.broadcast %10 : vector<1x384xf32> to vector<40x384xf32>
    %12 = arith.addf %9, %11 : vector<40x384xf32>
    %cst_11 = arith.constant 0.000000e+00 : f32
    %13 = vector.broadcast %cst_11 : f32 to vector<40x384xf32>
    %14 = arith.maximumf %12, %13 : vector<40x384xf32>
    %c0_12 = arith.constant 0 : index
    %c0_13 = arith.constant 0 : index
    %15 = vector.load %arg6[%c0_12, %c0_13] : memref<384x128xf32, #tpu.memory_space<vmem>>, vector<384x128xf32>
    %cst_14 = arith.constant dense<0.000000e+00> : vector<40x128xf32>
    %16 = tpu.matmul %14, %15, %cst_14 {dimension_numbers = #tpu.dot_dimension_numbers<[1], [0], [0], [1], [0, 0, 1, 1], [], []>} : vector<40x384xf32>, vector<384x128xf32>, vector<40x128xf32> -> vector<40x128xf32>
    %c0_15 = arith.constant 0 : index
    %c0_16 = arith.constant 0 : index
    %17 = vector.load %arg7[%c0_15, %c0_16] : memref<1x128xf32, #tpu.memory_space<vmem>>, vector<1x128xf32>
    %18 = vector.broadcast %17 : vector<1x128xf32> to vector<40x128xf32>
    %19 = arith.addf %16, %18 : vector<40x128xf32>
    %c0_17 = arith.constant 0 : index
    %c0_18 = arith.constant 0 : index
    %20 = vector.load %arg8[%c0_17, %c0_18] : memref<40x128xf32, #tpu.memory_space<vmem>>, vector<40x128xf32>
    tpu.vector_store %arg8[%c0_17, %c0_18], %19 {strides = array<i32>} : memref<40x128xf32, #tpu.memory_space<vmem>>, vector<40x128xf32>,
    return
  }
  func.func @transform_0(%arg0: i32) -> (i32, i32) {
    %c0_i32 = arith.constant 0 : i32
    %c0_i32_0 = arith.constant 0 : i32
    return %arg0, %c0_i32 : i32, i32
  }
  func.func @transform_1(%arg0: i32) -> (i32, i32) {
    %c0_i32 = arith.constant 0 : i32
    %c0_i32_0 = arith.constant 0 : i32
    %c0_i32_1 = arith.constant 0 : i32
    return %c0_i32, %c0_i32_0 : i32, i32
  }
  func.func @transform_2(%arg0: i32) -> (i32, i32) {
    %c0_i32 = arith.constant 0 : i32
    %c0_i32_0 = arith.constant 0 : i32
    %c0_i32_1 = arith.constant 0 : i32
    return %c0_i32, %c0_i32_0 : i32, i32
  }
  func.func @transform_3(%arg0: i32) -> (i32, i32) {
    %c0_i32 = arith.constant 0 : i32
    %c0_i32_0 = arith.constant 0 : i32
    %c0_i32_1 = arith.constant 0 : i32
    return %c0_i32, %c0_i32_0 : i32, i32
  }
  func.func @transform_4(%arg0: i32) -> (i32, i32) {
    %c0_i32 = arith.constant 0 : i32
    %c0_i32_0 = arith.constant 0 : i32
    %c0_i32_1 = arith.constant 0 : i32
    return %c0_i32, %c0_i32_0 : i32, i32
  }
  func.func @transform_5(%arg0: i32) -> (i32, i32) {
    %c0_i32 = arith.constant 0 : i32
    %c0_i32_0 = arith.constant 0 : i32
    %c0_i32_1 = arith.constant 0 : i32
    return %c0_i32, %c0_i32_0 : i32, i32
  }
  func.func @transform_6(%arg0: i32) -> (i32, i32) {
    %c0_i32 = arith.constant 0 : i32
    %c0_i32_0 = arith.constant 0 : i32
    %c0_i32_1 = arith.constant 0 : i32
    return %c0_i32, %c0_i32_0 : i32, i32
  }
  func.func @transform_7(%arg0: i32) -> (i32, i32) {
    %c0_i32 = arith.constant 0 : i32
    %c0_i32_0 = arith.constant 0 : i32
    return %arg0, %c0_i32 : i32, i32
  }
}

</mosaic_0001>

<bundles_post_ra>
// kernel: net_forward.1
= control target key start
LH: loop header
LB: loop body
LE: loop exit
PB: predicated region body
PF: predicated region fallthrough
CT: control target
= control target key end

     0   :  { %vm77_vm0 = vcmask 1045504   ;;  %vm1646_vm1 = vmmov 1   ;;  %v1647_v3 = vmov 0.0   ;;  %vm61_vm3 = vcmask 113664   ;;  %s2654_s1 = inlined_call_operand.vmem [shape: f32[14,512], index: 1, kind: input, shape index: {}]   ;;  %s2655_s0 = inlined_call_operand.vmem [shape: f32[40,14], index: 0, kind: input, shape index: {}]   ;;  %s2656_s3 = inlined_call_operand.vmem [shape: f32[512,384], index: 3, kind: input, shape index: {}]   ;;  %s2657_s2 = inlined_call_operand.vmem [shape: f32[1,512], index: 2, kind: input, shape index: {}]   ;;  %s2658_s5 = inlined_call_operand.vmem [shape: f32[384,128], index: 5, kind: input, shape index: {}]   ;;  %s2659_s4 = inlined_call_operand.vmem [shape: f32[1,384], index: 4, kind: input, shape index: {}]   ;;  %s2660_s6 = inlined_call_operand.vmem [shape: f32[1,128], index: 6, kind: input, shape index: {}]   ;;  %s2661_s7 = inlined_call_operand.vmem [shape: f32[40,128], index: 7, kind: output, shape index: {}]  }
   0x1   :  { %v32_v0 = vld [vmem:[%s2654_s1 + $0x8] sm:$0xff]  ;;  %vm1696_vm2 = vmpackc.low %vm77_vm0, %vm1646_vm1  ;;  %154 = vmatprep.mubr.f32.mxu0 %v1647_v3  ;;  %249 = vmatprep.mubr.f32.mxu1 %v1647_v3  ;;  %v31_v5 = vld [vmem:[%s2654_s1] sm:$0xff]  ;;  %vm1649_vm4 = vmmov 0  }
   0x2   :  { %v36_v1 = vld [vmem:[%s2654_s1 + $0x28] sm:$0x3f]  ;;  %v35_v6 = vld [vmem:[%s2654_s1 + $0x20] sm:$0x3f]  ;;  %v34_v9 = vld [vmem:[%s2654_s1 + $0x18] sm:$0xff] }
   0x3   :  { %v1362_v4 = vpack.c.bf16 %v36_v1, %v32_v0  ;;  %v1365_v7 = vpack.c.bf16 %v35_v6, %v31_v5  ;;  %v26_v8 = vld [vmem:[%s2655_s0] sm:$0xff]  ;;  %v38_v10 = vld [vmem:[%s2654_s1 + $0x38] sm:$0x3f]  ;;  %v33_v12 = vld [vmem:[%s2654_s1 + $0x10] sm:$0xff] }
   0x4   :  { %v1368_v11 = vpack.c.bf16 %v38_v10, %v34_v9  ;;  %v37_v13 = vld [vmem:[%s2654_s1 + $0x30] sm:$0x3f]  ;;  %v301_v14 = vld [vmem:[%s2656_s3 + $0x8] sm:$0xff]  ;;  %v304_v16 = vld [vmem:[%s2656_s3 + $0x20] sm:$0xff] }
   0x5   :  { %1364 = vmatprep.subr.msk.bf16.mxu0 %vm1696_vm2, %v1362_v4  ;;  %v1371_v15 = vpack.c.bf16 %v37_v13, %v33_v12  ;;  %v300_v17 = vld [vmem:[%s2656_s3] sm:$0xff]  ;;  %v303_v18 = vld [vmem:[%s2656_s3 + $0x18] sm:$0xff]  ;;  %v1374_v19 = vpack.c.bf16 %v304_v16, %v301_v14  ;;  %v310_v22 = vld [vmem:[%s2656_s3 + $0x50] sm:$0xff] }
   0x6   :  { %1367 = vmatpush1.bf16.msk.msra.mxu0 %vm1696_vm2, %v1365_v7  ;;  %1370 = vmatprep.subr.msk.bf16.mxu1 %vm1696_vm2, %v1368_v11  ;;  %v1376_v20 = vpack.c.bf16 %v303_v18, %v300_v17  ;;  %v307_v21 = vld [vmem:[%s2656_s3 + $0x38] sm:$0xff]  ;;  %v306_v23 = vld [vmem:[%s2656_s3 + $0x30] sm:$0xff]  ;;  %v309_v25 = vld [vmem:[%s2656_s3 + $0x48] sm:$0xff] }
   0x7   :  { %1373 = vmatpush1.bf16.msk.msra.mxu1 %vm1696_vm2, %v1371_v15  ;;  %v1378_v24 = vpack.c.bf16 %v310_v22, %v307_v21  ;;  %v313_v26 = vld [vmem:[%s2656_s3 + $0x68] sm:$0xff]  ;;  %v316_v27 = vld [vmem:[%s2656_s3 + $0x80] sm:$0xff]  ;;  %1375 = vmatprep.subr.bf16.mxu0 %v1374_v19  ;;  %v1380_v29 = vpack.c.bf16 %v309_v25, %v306_v23  ;;  %v315_v32 = vld [vmem:[%s2656_s3 + $0x78] sm:$0xff] }
   0x8   :  { %v27_v28 = vld [vmem:[%s2655_s0 + $0x8] sm:$0xff]  ;;  %v1382_v30 = vpack.c.bf16 %v316_v27, %v313_v26  ;;  %v312_v31 = vld [vmem:[%s2656_s3 + $0x60] sm:$0xff]  ;;  %v319_v33 = vld [vmem:[%s2656_s3 + $0x98] sm:$0xff] }
   0x9   :  { %1140 = vmatmul.mubr.msk.f32.vlgmr.msra.gmra.mrb[0].mxu0 %vm61_vm3, %v26_v8  ;;  %v322_v34 = vld [vmem:[%s2656_s3 + $0xb0] sm:$0xff]  ;;  %v1384_v36 = vpack.c.bf16 %v315_v32, %v312_v31  ;;  %v321_v39 = vld [vmem:[%s2656_s3 + $0xa8] sm:$0xff]  ;;  %v328_v41 = vld [vmem:[%s2656_s3 + $0xe0] sm:$0xff] }
   0xa   :  { %160 = vmatprep.mubr.f32.mxu0 %v1647_v3  ;;  %1377 = vmatpush1.bf16.msra.mxu0 %v1376_v20  ;;  %v28_v35 = vld [vmem:[%s2655_s0 + $0x10] sm:$0xff]  ;;  %v1386_v37 = vpack.c.bf16 %v322_v34, %v319_v33  ;;  %v325_v40 = vld [vmem:[%s2656_s3 + $0xc8] sm:$0xff]  ;;  %v29_v42 = vld [vmem:[%s2655_s0 + $0x18] sm:$0xff] }
   0xb   :  { %1147 = vmatmul.mubr.msk.f32.vlgmr.msra.gmra.mrb[0].mxu1 %vm61_vm3, %v26_v8  ;;  %1379 = vmatprep.subr.bf16.mxu0 %v1378_v24  ;;  %v318_v38 = vld [vmem:[%s2656_s3 + $0x90] sm:$0xff]  ;;  %v353_v44 = vld [vmem:[%s2656_s3 + $0x1a8] sm:$0xff]  ;;  %v1390_v49 = vpack.c.bf16 %v328_v41, %v325_v40  ;;  %v324_v50 = vld [vmem:[%s2656_s3 + $0xc0] sm:$0xff] }
   0xc   :  { %255 = vmatprep.mubr.f32.mxu1 %v1647_v3  ;;  %v350_v43 = vld [vmem:[%s2656_s3 + $0x190] sm:$0xff]  ;;  %v1388_v45 = vpack.c.bf16 %v321_v39, %v318_v38  ;;  %v305_v48 = vld [vmem:[%s2656_s3 + $0x28] sm:$0xff]  ;;  %v327_v51 = vld [vmem:[%s2656_s3 + $0xd8] sm:$0xff] }
   0xd   :  { %1141 = vmatmul.mubr.msk.f32.gmra.mrb[2].mxu0 %vm61_vm3, %v27_v28  ;;  %v1502_v46 = vpack.c.bf16 %v353_v44, %v350_v43  ;;  %v302_v47 = vld [vmem:[%s2656_s3 + $0x10] sm:$0xff]  ;;  %v356_v53 = vld [vmem:[%s2656_s3 + $0x1c0] sm:$0xff]  ;;  %v331_v54 = vld [vmem:[%s2656_s3 + $0xf8] sm:$0xff]  ;;  %v1392_v61 = vpack.c.bf16 %v327_v51, %v324_v50 }
   0xe   :  { %166 = vmatprep.mubr.f32.mxu0 %v1647_v3  ;;  %1381 = vmatpush1.bf16.msra.mxu0 %v1380_v29  ;;  %v1504_v52 = vpack.c.bf16 %v305_v48, %v302_v47  ;;  %v334_v55 = vld [vmem:[%s2656_s3 + $0x110] sm:$0xff]  ;;  %v359_v56 = vld [vmem:[%s2656_s3 + $0x1d8] sm:$0xff]  ;;  %v30_v57 = vld [vmem:[%s2655_s0 + $0x20] sm:$0xff] }
   0xf   :  { %1148 = vmatmul.mubr.msk.f32.gmra.mrb[2].mxu1 %vm61_vm3, %v27_v28  ;;  %1383 = vmatprep.subr.bf16.mxu0 %v1382_v30  ;;  %v1506_v58 = vpack.c.bf16 %v359_v56, %v356_v53  ;;  %v308_v59 = vld [vmem:[%s2656_s3 + $0x40] sm:$0xff]  ;;  %v311_v60 = vld [vmem:[%s2656_s3 + $0x58] sm:$0xff]  ;;  %v362_v63 = vld [vmem:[%s2656_s3 + $0x1f0] sm:$0xff]  ;;  %v1394_v1 = vpack.c.bf16 %v334_v55, %v331_v54 }
  0x10   :  { %261 = vmatprep.mubr.f32.mxu1 %v1647_v3  ;;  %1503 = vmatprep.subr.bf16.mxu1 %v1502_v46  ;;  %v1508_v62 = vpack.c.bf16 %v311_v60, %v308_v59  ;;  %v365_v0 = vld [vmem:[%s2656_s3 + $0x208] sm:$0xff]  ;;  %v330_v2 = vld [vmem:[%s2656_s3 + $0xf0] sm:$0xff]  ;;  %v340_v7 = vld [vmem:[%s2656_s3 + $0x140] sm:$0xff] }
  0x11   :  { %1142 = vmatmul.mubr.msk.f32.gmra.mrb[4].mxu0 %vm61_vm3, %v28_v35  ;;  %1505 = vmatpush3.bf16.msra.mxu1 %v1504_v52  ;;  %v333_v4 = vld [vmem:[%s2656_s3 + $0x108] sm:$0xff]  ;;  %v314_v5 = vld [vmem:[%s2656_s3 + $0x70] sm:$0xff]  ;;  %v1510_v8 = vpack.c.bf16 %v365_v0, %v362_v63  ;;  %v368_v10 = vld [vmem:[%s2656_s3 + $0x220] sm:$0xff] }
  0x12   :  { %172 = vmatprep.mubr.f32.mxu0 %v1647_v3  ;;  %1385 = vmatpush1.bf16.msra.mxu0 %v1384_v36  ;;  %v337_v6 = vld [vmem:[%s2656_s3 + $0x128] sm:$0xff]  ;;  %v371_v11 = vld [vmem:[%s2656_s3 + $0x238] sm:$0xff]  ;;  %v1396_v12 = vpack.c.bf16 %v333_v4, %v330_v2  ;;  %v336_v13 = vld [vmem:[%s2656_s3 + $0x120] sm:$0xff] }
  0x13   :  { %1149 = vmatmul.mubr.msk.f32.gmra.mrb[4].mxu1 %vm61_vm3, %v28_v35  ;;  %1387 = vmatprep.subr.bf16.mxu0 %v1386_v37  ;;  %v317_v9 = vld [vmem:[%s2656_s3 + $0x88] sm:$0xff]  ;;  %v339_v14 = vld [vmem:[%s2656_s3 + $0x138] sm:$0xff]  ;;  %v1398_v16 = vpack.c.bf16 %v340_v7, %v337_v6  ;;  %v1514_v18 = vpack.c.bf16 %v371_v11, %v368_v10  ;;  %v320_v19 = vld [vmem:[%s2656_s3 + $0xa0] sm:$0xff] }
  0x14   :  { %267 = vmatprep.mubr.f32.mxu1 %v1647_v3  ;;  %1507 = vmatprep.subr.bf16.mxu1 %v1506_v58  ;;  %v1512_v15 = vpack.c.bf16 %v317_v9, %v314_v5  ;;  %v343_v17 = vld [vmem:[%s2656_s3 + $0x158] sm:$0xff]  ;;  %v346_v21 = vld [vmem:[%s2656_s3 + $0x170] sm:$0xff]  ;;  %v377_v23 = vld [vmem:[%s2656_s3 + $0x268] sm:$0xff]  ;;  %v1400_v24 = vpack.c.bf16 %v339_v14, %v336_v13 }
  0x15   :  { %1143 = vmatmul.mubr.msk.f32.gmra.mrb[6].mxu0 %vm61_vm3, %v29_v42  ;;  %1509 = vmatpush3.bf16.msra.mxu1 %v1508_v62  ;;  %v323_v20 = vld [vmem:[%s2656_s3 + $0xb8] sm:$0xff]  ;;  %v374_v22 = vld [vmem:[%s2656_s3 + $0x250] sm:$0xff]  ;;  %v345_v26 = vld [vmem:[%s2656_s3 + $0x168] sm:$0xff]  ;;  %v1402_v28 = vpack.c.bf16 %v346_v21, %v343_v17 }
  0x16   :  { %178 = vmatprep.mubr.f32.mxu0 %v1647_v3  ;;  %1389 = vmatpush1.bf16.msra.mxu0 %v1388_v45  ;;  %v342_v25 = vld [vmem:[%s2656_s3 + $0x150] sm:$0xff]  ;;  %v1516_v27 = vpack.c.bf16 %v323_v20, %v320_v19  ;;  %v349_v29 = vld [vmem:[%s2656_s3 + $0x188] sm:$0xff]  ;;  %v1518_v30 = vpack.c.bf16 %v377_v23, %v374_v22  ;;  %v352_v33 = vld [vmem:[%s2656_s3 + $0x1a0] sm:$0xff] }
  0x17   :  { %1150 = vmatmul.mubr.msk.f32.gmra.mrb[6].mxu1 %vm61_vm3, %v29_v42  ;;  %1391 = vmatprep.subr.bf16.mxu0 %v1390_v49  ;;  %v326_v31 = vld [vmem:[%s2656_s3 + $0xd0] sm:$0xff]  ;;  %v329_v32 = vld [vmem:[%s2656_s3 + $0xe8] sm:$0xff]  ;;  %v380_v34 = vld [vmem:[%s2656_s3 + $0x280] sm:$0xff]  ;;  %v1404_v36 = vpack.c.bf16 %v345_v26, %v342_v25  ;;  %v1406_v40 = vpack.c.bf16 %v352_v33, %v349_v29 }
  0x18   :  { %273 = vmatprep.mubr.f32.mxu1 %v1647_v3  ;;  %1511 = vmatprep.subr.bf16.mxu1 %v1510_v8  ;;  %v383_v35 = vld [vmem:[%s2656_s3 + $0x298] sm:$0xff]  ;;  %v348_v37 = vld [vmem:[%s2656_s3 + $0x180] sm:$0xff]  ;;  %v1520_v39 = vpack.c.bf16 %v329_v32, %v326_v31  ;;  %v358_v45 = vld [vmem:[%s2656_s3 + $0x1d0] sm:$0xff] }
  0x19   :  { %1144 = vmatmul.mubr.msk.f32.gmra.mrb[8].mxu0 %vm61_vm3, %v30_v57  ;;  %1513 = vmatpush3.bf16.msra.mxu1 %v1512_v15  ;;  %v351_v38 = vld [vmem:[%s2656_s3 + $0x198] sm:$0xff]  ;;  %v1522_v42 = vpack.c.bf16 %v383_v35, %v380_v34  ;;  %v332_v43 = vld [vmem:[%s2656_s3 + $0x100] sm:$0xff]  ;;  %v386_v46 = vld [vmem:[%s2656_s3 + $0x2b0] sm:$0xff] }
  0x1a   :  { %1393 = vmatpush1.bf16.msra.mxu0 %v1392_v61  ;;  %1515 = vmatprep.subr.bf16.mxu1 %v1514_v18  ;;  %v355_v41 = vld [vmem:[%s2656_s3 + $0x1b8] sm:$0xff]  ;;  %v389_v47 = vld [vmem:[%s2656_s3 + $0x2c8] sm:$0xff]  ;;  %v1408_v48 = vpack.c.bf16 %v351_v38, %v348_v37  ;;  %v354_v49 = vld [vmem:[%s2656_s3 + $0x1b0] sm:$0xff] }
  0x1b   :  { %1151 = vmatmul.mubr.msk.f32.gmra.mrb[8].mxu1 %vm61_vm3, %v30_v57  ;;  %1395 = vmatprep.subr.bf16.mxu0 %v1394_v1  ;;  %v335_v44 = vld [vmem:[%s2656_s3 + $0x118] sm:$0xff]  ;;  %v1410_v51 = vpack.c.bf16 %v358_v45, %v355_v41  ;;  %v357_v52 = vld [vmem:[%s2656_s3 + $0x1c8] sm:$0xff]  ;;  %v1526_v53 = vpack.c.bf16 %v389_v47, %v386_v46  ;;  %v338_v54 = vld [vmem:[%s2656_s3 + $0x130] sm:$0xff] }
  0x1c   :  { %v1524_v50 = vpack.c.bf16 %v335_v44, %v332_v43  ;;  %v341_v55 = vld [vmem:[%s2656_s3 + $0x148] sm:$0xff]  ;;  %v364_v57 = vld [vmem:[%s2656_s3 + $0x200] sm:$0xff]  ;;  %v1412_v58 = vpack.c.bf16 %v357_v52, %v354_v49  ;;  %v363_v62 = vld [vmem:[%s2656_s3 + $0x1f8] sm:$0xff]  ;;  %v41_v43 = vlaneseq }
  0x1d   :  { %1517 = vmatpush3.bf16.msra.mxu1 %v1516_v27  ;;  %v361_v56 = vld [vmem:[%s2656_s3 + $0x1e8] sm:$0xff]  ;;  %v1528_v59 = vpack.c.bf16 %v341_v55, %v338_v54  ;;  %v360_v61 = vld [vmem:[%s2656_s3 + $0x1e0] sm:$0xff]  ;;  %v367_v63 = vld [vmem:[%s2656_s3 + $0x218] sm:$0xff] }
  0x1e   :  { %1397 = vmatpush1.bf16.msra.mxu0 %v1396_v12  ;;  %1519 = vmatprep.subr.bf16.mxu1 %v1518_v30  ;;  %v1414_v60 = vpack.c.bf16 %v364_v57, %v361_v56  ;;  %v370_v0 = vld [vmem:[%s2656_s3 + $0x230] sm:$0xff]  ;;  %v1416_v1 = vpack.c.bf16 %v363_v62, %v360_v61  ;;  %v369_v5 = vld [vmem:[%s2656_s3 + $0x228] sm:$0xff]  ;;  %v376_v7 = vld [vmem:[%s2656_s3 + $0x260] sm:$0xff]  ;;  %v2061_v44 = vshrl.u32 %v41_v43, 7 }
  0x1f   :  { %1399 = vmatprep.subr.bf16.mxu0 %v1398_v16  ;;  %v1418_v2 = vpack.c.bf16 %v370_v0, %v367_v63  ;;  %v366_v4 = vld [vmem:[%s2656_s3 + $0x210] sm:$0xff]  ;;  %v373_v6 = vld [vmem:[%s2656_s3 + $0x248] sm:$0xff]  ;;  %v372_v10 = vld [vmem:[%s2656_s3 + $0x240] sm:$0xff] }
  0x20   :  { %v1420_v8 = vpack.c.bf16 %v369_v5, %v366_v4  ;;  %v1422_v9 = vpack.c.bf16 %v376_v7, %v373_v6  ;;  %v375_v11 = vld [vmem:[%s2656_s3 + $0x258] sm:$0xff]  ;;  %v382_v13 = vld [vmem:[%s2656_s3 + $0x290] sm:$0xff]  ;;  %v381_v17 = vld [vmem:[%s2656_s3 + $0x288] sm:$0xff]  ;;  %v43_v45 = vsub.s32 0, %v2061_v44  ;;  %v47_v47 = vsub.s32 1, %v2061_v44 }
  0x21   :  { %1521 = vmatpush3.bf16.msra.mxu1 %v1520_v39  ;;  %v379_v12 = vld [vmem:[%s2656_s3 + $0x278] sm:$0xff]  ;;  %v1424_v14 = vpack.c.bf16 %v375_v11, %v372_v10  ;;  %v378_v16 = vld [vmem:[%s2656_s3 + $0x270] sm:$0xff]  ;;  %v385_v18 = vld [vmem:[%s2656_s3 + $0x2a8] sm:$0xff] }
  0x22   :  { %1401 = vmatpush1.bf16.msra.mxu0 %v1400_v24  ;;  %1523 = vmatprep.subr.bf16.mxu1 %v1522_v42  ;;  %v1426_v15 = vpack.c.bf16 %v382_v13, %v379_v12  ;;  %v388_v19 = vld [vmem:[%s2656_s3 + $0x2c0] sm:$0xff]  ;;  %v1428_v20 = vpack.c.bf16 %v381_v17, %v378_v16  ;;  %v387_v23 = vld [vmem:[%s2656_s3 + $0x2b8] sm:$0xff]  ;;  %v394_v26 = vld [vmem:[%s2656_s3 + $0x2f0] sm:$0xff] }
  0x23   :  { %1403 = vmatprep.subr.bf16.mxu0 %v1402_v28  ;;  %v1430_v21 = vpack.c.bf16 %v388_v19, %v385_v18  ;;  %v384_v22 = vld [vmem:[%s2656_s3 + $0x2a0] sm:$0xff]  ;;  %v391_v25 = vld [vmem:[%s2656_s3 + $0x2d8] sm:$0xff]  ;;  %v390_v30 = vld [vmem:[%s2656_s3 + $0x2d0] sm:$0xff] }
  0x24   :  { %v1432_v24 = vpack.c.bf16 %v387_v23, %v384_v22  ;;  %v392_v27 = vld [vmem:[%s2656_s3 + $0x2e0] sm:$0xff]  ;;  %v1434_v28 = vpack.c.bf16 %v394_v26, %v391_v25  ;;  %v395_v29 = vld [vmem:[%s2656_s3 + $0x2f8] sm:$0xff]  ;;  %v393_v31 = vld [vmem:[%s2656_s3 + $0x2e8] sm:$0xff] }
  0x25   :  { %1525 = vmatpush3.bf16.msra.mxu1 %v1524_v50  ;;  %v1530_v32 = vpack.c.bf16 %v395_v29, %v392_v27  ;;  %v1436_v33 = vpack.c.bf16 %v393_v31, %v390_v30  ;;  %v344_v34 = vld [vmem:[%s2656_s3 + $0x160] sm:$0xff]  ;;  %v347_v35 = vld [vmem:[%s2656_s3 + $0x178] sm:$0xff]  ;;  %v397_v37 = vld [vmem:[%s2656_s3 + $0x308] sm:$0xff] }
  0x26   :  { %1405 = vmatpush1.bf16.msra.mxu0 %v1404_v36  ;;  %1527 = vmatprep.subr.bf16.mxu1 %v1526_v53  ;;  %v1532_v36 = vpack.c.bf16 %v347_v35, %v344_v34  ;;  %v400_v38 = vld [vmem:[%s2656_s3 + $0x320] sm:$0xff]  ;;  %v446_v39 = vld [vmem:[%s2656_s3 + $0x490] sm:$0xff]  ;;  %v449_v41 = vld [vmem:[%s2656_s3 + $0x4a8] sm:$0xff] }
  0x27   :  { %1407 = vmatprep.subr.bf16.mxu0 %v1406_v40  ;;  %v1438_v40 = vpack.c.bf16 %v400_v38, %v397_v37  ;;  %v1534_v42 = vpack.c.bf16 %v449_v41, %v446_v39  ;;  %v2067_v46 = vld [vmem:[%s2657_s2] sm:$0xf]  ;;  %v399_v52 = vld [vmem:[%s2656_s3 + $0x318] sm:$0xff]  ;;  %v398_v55 = vld [vmem:[%s2656_s3 + $0x310] sm:$0xff]  ;;  %v55_v39 = vsub.s32 3, %v2061_v44 }
  0x28   :  { %v2078_v49 = vrot.slane %v2067_v46, %v47_v47  ;;  %v401_v56 = vld [vmem:[%s2656_s3 + $0x328] sm:$0xff]  ;;  %v403_v57 = vld [vmem:[%s2656_s3 + $0x338] sm:$0xff]  ;;  %v404_v10 = vld [vmem:[%s2656_s3 + $0x340] sm:$0xff] }
  0x29   :  { %1529 = vmatpush3.bf16.msra.mxu1 %v1528_v59  ;;  %v406_v59 = vld [vmem:[%s2656_s3 + $0x350] sm:$0xff]  ;;  %v455_v61 = vld [vmem:[%s2656_s3 + $0x4d8] sm:$0xff]  ;;  %v405_v4 = vld [vmem:[%s2656_s3 + $0x348] sm:$0xff] }
  0x2a   :  { %1409 = vmatpush1.bf16.msra.mxu0 %v1408_v48  ;;  %1531 = vmatprep.subr.bf16.mxu1 %v1530_v32  ;;  %v2073_v48 = vrot.slane %v2067_v46, %v43_v45  ;;  %v407_v11 = vld [vmem:[%s2656_s3 + $0x358] sm:$0xff]  ;;  %v409_v12 = vld [vmem:[%s2656_s3 + $0x368] sm:$0xff]  ;;  %v458_v16 = vld [vmem:[%s2656_s3 + $0x4f0] sm:$0xff] }
  0x2b   :  { %1411 = vmatprep.subr.bf16.mxu0 %v1410_v51  ;;  %v396_v51 = vld [vmem:[%s2656_s3 + $0x300] sm:$0xff]  ;;  %v461_v17 = vld [vmem:[%s2656_s3 + $0x508] sm:$0xff]  ;;  %v1540_v22 = vpack.c.bf16 %v407_v11, %v404_v10  ;;  %v410_v30 = vld [vmem:[%s2656_s3 + $0x370] sm:$0xff] }
  0x2c   :  { %v1440_v0 = vpack.c.bf16 %v399_v52, %v396_v51  ;;  %v408_v23 = vld [vmem:[%s2656_s3 + $0x360] sm:$0xff]  ;;  %v1542_v29 = vpack.c.bf16 %v461_v17, %v458_v16  ;;  %v413_v31 = vld [vmem:[%s2656_s3 + $0x388] sm:$0xff]  ;;  %v415_v32 = vld [vmem:[%s2656_s3 + $0x398] sm:$0xff] }
  0x2d   :  { %1533 = vmatpush3.bf16.msra.mxu1 %v1532_v36  ;;  %v418_v35 = vld [vmem:[%s2656_s3 + $0x3b0] sm:$0xff]  ;;  %v464_v36 = vld [vmem:[%s2656_s3 + $0x520] sm:$0xff]  ;;  %v467_v37 = vld [vmem:[%s2656_s3 + $0x538] sm:$0xff]  ;;  %v1544_v43 = vpack.c.bf16 %v413_v31, %v410_v30 }
  0x2e   :  { %1413 = vmatpush1.bf16.msra.mxu0 %v1412_v58  ;;  %1535 = vmatprep.subr.bf16.mxu1 %v1534_v42  ;;  %v417_v51 = vld [vmem:[%s2656_s3 + $0x3a8] sm:$0xff]  ;;  %v420_v10 = vld [vmem:[%s2656_s3 + $0x3c0] sm:$0xff]  ;;  %v423_v11 = vld [vmem:[%s2656_s3 + $0x3d8] sm:$0xff] }
  0x2f   :  { %1415 = vmatprep.subr.bf16.mxu0 %v1414_v60  ;;  %v452_v60 = vld [vmem:[%s2656_s3 + $0x4c0] sm:$0xff]  ;;  %v422_v17 = vld [vmem:[%s2656_s3 + $0x3d0] sm:$0xff]  ;;  %v1456_v30 = vpack.c.bf16 %v423_v11, %v420_v10  ;;  %v441_v11 = vld [vmem:[%s2656_s3 + $0x468] sm:$0xff] }
  0x32   :  { %1417 = vmatpush1.bf16.msra.mxu0 %v1416_v1  ;;  %v1536_v1 = vpack.c.bf16 %v401_v56, %v398_v55  ;;  %v1450_v55 = vpack.c.bf16 %v418_v35, %v415_v32  ;;  %v1546_v56 = vpack.c.bf16 %v467_v37, %v464_v36  ;;  %v426_v32 = vld [vmem:[%s2656_s3 + $0x3f0] sm:$0xff]  ;;  %v428_v36 = vld [vmem:[%s2656_s3 + $0x400] sm:$0xff]  ;;  %v431_v37 = vld [vmem:[%s2656_s3 + $0x418] sm:$0xff] }
  0x33   :  { %1419 = vmatprep.subr.bf16.mxu0 %v1418_v2  ;;  %v402_v2 = vld [vmem:[%s2656_s3 + $0x330] sm:$0xff] }
  0x36   :  { %1421 = vmatpush1.bf16.msra.mxu0 %v1420_v8  ;;  %v1442_v8 = vpack.c.bf16 %v406_v59, %v403_v57  ;;  %v416_v57 = vld [vmem:[%s2656_s3 + $0x3a0] sm:$0xff]  ;;  %v421_v59 = vld [vmem:[%s2656_s3 + $0x3c8] sm:$0xff] }
  0x37   :  { %1423 = vmatprep.subr.bf16.mxu0 %v1422_v9  ;;  %v1538_v9 = vpack.c.bf16 %v455_v61, %v452_v60 }
  0x3a   :  { %1425 = vmatpush1.bf16.msra.mxu0 %v1424_v14 }
  0x3b   :  { %1427 = vmatprep.subr.bf16.mxu0 %v1426_v15  ;;  %v412_v15 = vld [vmem:[%s2656_s3 + $0x380] sm:$0xff] }
  0x3e   :  { %1429 = vmatpush1.bf16.msra.mxu0 %v1428_v20 }
  0x3f   :  { %1431 = vmatprep.subr.bf16.mxu0 %v1430_v21  ;;  %v1444_v21 = vpack.c.bf16 %v405_v4, %v402_v2  ;;  %v2198_v4 = vrot.slane %v2067_v46, %v55_v39  ;;  %v436_v39 = vld [vmem:[%s2656_s3 + $0x440] sm:$0xff] }
  0x42   :  { %1433 = vmatpush1.bf16.msra.mxu0 %v1432_v24  ;;  %v411_v24 = vld [vmem:[%s2656_s3 + $0x378] sm:$0xff] }
  0x43   :  { %1435 = vmatprep.subr.bf16.mxu0 %v1434_v28  ;;  %v1446_v28 = vpack.c.bf16 %v412_v15, %v409_v12  ;;  %v1448_v42 = vpack.c.bf16 %v411_v24, %v408_v23  ;;  %v430_v23 = vld [vmem:[%s2656_s3 + $0x410] sm:$0xff]  ;;  %v476_v24 = vld [vmem:[%s2656_s3 + $0x580] sm:$0xff] }
  0x46   :  { %1437 = vmatpush1.bf16.msra.mxu0 %v1436_v33 }
  0x47   :  { %1439 = vmatprep.subr.bf16.mxu0 %v1438_v40 }
  0xdc   :  { %v156_v50 = vpop.f32.mrb[0].mxu0 }
  0xdd   :  { %v157_v53 = vadd.f32 %v156_v50, %v2073_v48  ;;  %v158_v54 = vpop.f32.mrb[1].mxu0  ;;  %v414_v50 = vld [vmem:[%s2656_s3 + $0x390] sm:$0xff] }
  0xde   :  { %v159_v58 = vadd.f32 %v158_v54, %v2078_v49  ;;  %v2106_v62 = vpop.f32.mrb[0].mxu1 }
  0xdf   :  { %v2114_v6 = vpop.f32.mrb[1].mxu1  ;;  %v280_v7 = vmax.f32 %v157_v53, 0.0 }
  0xe0   :  { %v281_v63 = vmax.f32 %v159_v58, 0.0  ;;  %v162_v5 = vpop.f32.mrb[2].mxu0  ;;  %v419_v58 = vld [vmem:[%s2656_s3 + $0x3b8] sm:$0xff] }
  0xe1   :  { %v163_v13 = vadd.f32 %v162_v5, %v2073_v48  ;;  %v164_v14 = vpop.f32.mrb[3].mxu0 }
  0xe2   :  { %573 = vmatprep.mubr.f32.mxu0 %v281_v63  ;;  %763 = vmatprep.mubr.f32.mxu1 %v281_v63  ;;  %v165_v18 = vadd.f32 %v164_v14, %v2078_v49  ;;  %v2136_v20 = vpop.f32.mrb[2].mxu1  ;;  %v424_v63 = vld [vmem:[%s2656_s3 + $0x3e0] sm:$0xff] }
  0xe3   :  { %574 = vmatmul.mubr.f32.vlgmr.msra.gmra.mrb[10].mxu0 %v280_v7  ;;  %764 = vmatmul.mubr.f32.vlgmr.msra.gmra.mrb[10].mxu1 %v280_v7  ;;  %v284_v19 = vmax.f32 %v163_v13, 0.0  ;;  %v2144_v27 = vpop.f32.mrb[3].mxu1  ;;  %v1454_v15 = vpack.c.bf16 %v424_v63, %v421_v59  ;;  %v437_v59 = vld [vmem:[%s2656_s3 + $0x448] sm:$0xff]  ;;  %v488_v63 = vld [vmem:[%s2656_s3 + $0x5e0] sm:$0xff] }
  0xe4   :  { %1441 = vmatpush1.bf16.msra.mxu0 %v1440_v0  ;;  %1537 = vmatpush3.bf16.msra.mxu1 %v1536_v1  ;;  %v285_v25 = vmax.f32 %v165_v18, 0.0  ;;  %v168_v26 = vpop.f32.mrb[4].mxu0  ;;  %v470_v0 = vld [vmem:[%s2656_s3 + $0x550] sm:$0xff]  ;;  %v473_v1 = vld [vmem:[%s2656_s3 + $0x568] sm:$0xff] }
  0xe5   :  { %1443 = vmatprep.subr.bf16.mxu0 %v1442_v8  ;;  %1539 = vmatprep.subr.bf16.mxu1 %v1538_v9  ;;  %v169_v33 = vadd.f32 %v168_v26, %v2073_v48  ;;  %v170_v34 = vpop.f32.mrb[5].mxu0  ;;  %v1452_v8 = vpack.c.bf16 %v417_v51, %v414_v50  ;;  %v1548_v9 = vpack.c.bf16 %v419_v58, %v416_v57  ;;  %v425_v18 = vld [vmem:[%s2656_s3 + $0x3e8] sm:$0xff]  ;;  %v51_v50 = vsub.s32 2, %v2061_v44  ;;  %v434_v58 = vld [vmem:[%s2656_s3 + $0x430] sm:$0xff] }
  0xe6   :  { %v171_v38 = vadd.f32 %v170_v34, %v2078_v49  ;;  %768 = vmatprep.mubr.f32.mxu1 %v285_v25  ;;  %579 = vmatprep.mubr.f32.mxu0 %v285_v25  ;;  %v2167_v41 = vpop.f32.mrb[4].mxu1  ;;  %v1550_v16 = vpack.c.bf16 %v473_v1, %v470_v0  ;;  %v479_v25 = vld [vmem:[%s2656_s3 + $0x598] sm:$0xff]  ;;  %v1552_v31 = vpack.c.bf16 %v425_v18, %v422_v17  ;;  %v928_v44 = vld [vmem:[%s2658_s5 + $0x110] sm:$0xff] }
  0xe7   :  { %v288_v40 = vmax.f32 %v169_v33, 0.0  ;;  %769 = vmatmul.mubr.f32.gmra.mrb[12].mxu1 %v284_v19  ;;  %580 = vmatmul.mubr.f32.gmra.mrb[12].mxu0 %v284_v19  ;;  %v2175_v54 = vpop.f32.mrb[5].mxu1  ;;  %v427_v19 = vld [vmem:[%s2656_s3 + $0x3f8] sm:$0xff]  ;;  %v1554_v35 = vpack.c.bf16 %v479_v25, %v476_v24  ;;  %v2288_v1 = vrot.slane %v2067_v46, %v51_v50  ;;  %v440_v46 = vld [vmem:[%s2656_s3 + $0x460] sm:$0xff] }
  0xe8   :  { %1445 = vmatpush1.bf16.msra.mxu0 %v1444_v21  ;;  %1541 = vmatpush3.bf16.msra.mxu1 %v1540_v22  ;;  %v289_v52 = vmax.f32 %v171_v38, 0.0  ;;  %v174_v53 = vpop.f32.mrb[6].mxu0  ;;  %v1458_v34 = vpack.c.bf16 %v430_v23, %v427_v19  ;;  %v433_v38 = vld [vmem:[%s2656_s3 + $0x428] sm:$0xff]  ;;  %v491_v0 = vld [vmem:[%s2656_s3 + $0x5f8] sm:$0xff]  ;;  %v2314_v19 = vadd.f32 %v2144_v27, %v2198_v4  ;;  %v454_v27 = vld [vmem:[%s2656_s3 + $0x4d0] sm:$0xff] }
  0xe9   :  { %1447 = vmatprep.subr.bf16.mxu0 %v1446_v28  ;;  %1543 = vmatprep.subr.bf16.mxu1 %v1542_v29  ;;  %v175_v60 = vadd.f32 %v174_v53, %v2073_v48  ;;  %v176_v61 = vpop.f32.mrb[7].mxu0  ;;  %v254_v28 = vadd.f32 %v2114_v6, %v2198_v4  ;;  %v432_v53 = vld [vmem:[%s2656_s3 + $0x420] sm:$0xff]  ;;  %v1562_v10 = vpack.c.bf16 %v491_v0, %v488_v63  ;;  %v451_v23 = vld [vmem:[%s2656_s3 + $0x4b8] sm:$0xff] }
  0xea   :  { %v177_v2 = vadd.f32 %v176_v61, %v2078_v49  ;;  %773 = vmatprep.mubr.f32.mxu1 %v289_v52  ;;  %585 = vmatprep.mubr.f32.mxu0 %v289_v52  ;;  %v2200_v7 = vpop.f32.mrb[6].mxu1  ;;  %v1556_v52 = vpack.c.bf16 %v431_v37, %v428_v36  ;;  %v442_v61 = vld [vmem:[%s2656_s3 + $0x470] sm:$0xff]  ;;  %v2331_v25 = vadd.f32 %v2136_v20, %v2288_v1  ;;  %v453_v20 = vld [vmem:[%s2656_s3 + $0x4c8] sm:$0xff]  ;;  %v471_v63 = vld [vmem:[%s2656_s3 + $0x558] sm:$0xff] }
  0xeb   :  { %v292_v5 = vmax.f32 %v175_v60, 0.0  ;;  %774 = vmatmul.mubr.f32.gmra.mrb[14].mxu1 %v288_v40  ;;  %586 = vmatmul.mubr.f32.gmra.mrb[14].mxu0 %v288_v40  ;;  %v2208_v14 = vpop.f32.mrb[7].mxu1  ;;  %v482_v40 = vld [vmem:[%s2656_s3 + $0x5b0] sm:$0xff]  ;;  %v439_v60 = vld [vmem:[%s2656_s3 + $0x458] sm:$0xff] }
  0xec   :  { %1449 = vmatpush1.bf16.msra.mxu0 %v1448_v42  ;;  %1545 = vmatpush3.bf16.msra.mxu1 %v1544_v43  ;;  %v293_v12 = vmax.f32 %v177_v2, 0.0  ;;  %v180_v13 = vpop.f32.mrb[8].mxu0  ;;  %v485_v42 = vld [vmem:[%s2656_s3 + $0x5c8] sm:$0xff]  ;;  %v283_v43 = vmax.f32 %v254_v28, 0.0  ;;  %v287_v28 = vmax.f32 %v2314_v19, 0.0  ;;  %v2362_v36 = vadd.f32 %v2208_v14, %v2198_v4  ;;  %v475_v0 = vld [vmem:[%s2656_s3 + $0x578] sm:$0xff] }
  0xed   :  { %1451 = vmatprep.subr.bf16.mxu0 %v1450_v55  ;;  %1547 = vmatprep.subr.bf16.mxu1 %v1546_v56  ;;  %v181_v21 = vadd.f32 %v180_v13, %v2073_v48  ;;  %v182_v22 = vpop.f32.mrb[9].mxu0  ;;  %v435_v55 = vld [vmem:[%s2656_s3 + $0x438] sm:$0xff]  ;;  %v1462_v56 = vpack.c.bf16 %v436_v39, %v433_v38  ;;  %v1558_v57 = vpack.c.bf16 %v485_v42, %v482_v40  ;;  %v445_v13 = vld [vmem:[%s2656_s3 + $0x488] sm:$0xff]  ;;  %v456_v38 = vld [vmem:[%s2656_s3 + $0x4e0] sm:$0xff] }
  0xee   :  { %v183_v26 = vadd.f32 %v182_v22, %v2078_v49  ;;  %778 = vmatprep.mubr.f32.mxu1 %v293_v12  ;;  %591 = vmatprep.mubr.f32.mxu0 %v293_v12  ;;  %v2232_v29 = vpop.f32.mrb[8].mxu1  ;;  %v429_v49 = vld [vmem:[%s2656_s3 + $0x408] sm:$0xff]  ;;  %v1464_v2 = vpack.c.bf16 %v435_v55, %v432_v53  ;;  %v443_v12 = vld [vmem:[%s2656_s3 + $0x478] sm:$0xff]  ;;  %v444_v22 = vld [vmem:[%s2656_s3 + $0x480] sm:$0xff]  ;;  %v270_v42 = vadd.f32 %v2200_v7, %v2288_v1 }
  0xef   :  { %v296_v48 = vmax.f32 %v181_v21, 0.0  ;;  %779 = vmatmul.mubr.f32.gmra.mrb[16].mxu1 %v292_v5  ;;  %592 = vmatmul.mubr.f32.gmra.mrb[16].mxu0 %v292_v5  ;;  %v2240_v6 = vpop.f32.mrb[9].mxu1  ;;  %v1460_v51 = vpack.c.bf16 %v429_v49, %v426_v32  ;;  %v1560_v5 = vpack.c.bf16 %v437_v59, %v434_v58  ;;  %v1564_v18 = vpack.c.bf16 %v443_v12, %v440_v46  ;;  %v457_v32 = vld [vmem:[%s2656_s3 + $0x4e8] sm:$0xff]  ;;  %v460_v49 = vld [vmem:[%s2656_s3 + $0x500] sm:$0xff]  ;;  %v463_v39 = vld [vmem:[%s2656_s3 + $0x518] sm:$0xff] }
  0xf0   :  { %1453 = vmatpush1.bf16.msra.mxu0 %v1452_v8  ;;  %1549 = vmatpush3.bf16.msra.mxu1 %v1548_v9  ;;  %v297_v33 = vmax.f32 %v183_v26, 0.0  ;;  %v438_v8 = vld [vmem:[%s2656_s3 + $0x450] sm:$0xff]  ;;  %v1466_v9 = vpack.c.bf16 %v442_v61, %v439_v60  ;;  %v1478_v37 = vpack.c.bf16 %v460_v49, %v457_v32  ;;  %v465_v7 = vld [vmem:[%s2656_s3 + $0x528] sm:$0xff]  ;;  %v294_v58 = vmax.f32 %v270_v42, 0.0  ;;  %v468_v61 = vld [vmem:[%s2656_s3 + $0x540] sm:$0xff] }
  0xf1   :  { %1455 = vmatprep.subr.bf16.mxu0 %v1454_v15  ;;  %1551 = vmatprep.subr.bf16.mxu1 %v1550_v16  ;;  %v448_v15 = vld [vmem:[%s2656_s3 + $0x4a0] sm:$0xff]  ;;  %v2310_v16 = vadd.f32 %v2106_v62, %v2288_v1  ;;  %v1468_v17 = vpack.c.bf16 %v441_v11, %v438_v8  ;;  %v447_v62 = vld [vmem:[%s2656_s3 + $0x498] sm:$0xff]  ;;  %v466_v40 = vld [vmem:[%s2656_s3 + $0x530] sm:$0xff] }
  0xf2   :  { %783 = vmatprep.mubr.f32.mxu1 %v297_v33  ;;  %597 = vmatprep.mubr.f32.mxu0 %v297_v33  ;;  %v1470_v21 = vpack.c.bf16 %v448_v15, %v445_v13  ;;  %v1472_v26 = vpack.c.bf16 %v447_v62, %v444_v22  ;;  %v2355_v33 = vadd.f32 %v2167_v41, %v2288_v1  ;;  %v459_v41 = vld [vmem:[%s2656_s3 + $0x4f8] sm:$0xff]  ;;  %v462_v55 = vld [vmem:[%s2656_s3 + $0x510] sm:$0xff]  ;;  %v484_v11 = vld [vmem:[%s2656_s3 + $0x5c0] sm:$0xff] }
  0xf3   :  { %784 = vmatmul.mubr.f32.gmra.mrb[18].mxu1 %v296_v48  ;;  %598 = vmatmul.mubr.f32.gmra.mrb[18].mxu0 %v296_v48  ;;  %v282_v24 = vmax.f32 %v2310_v16, 0.0  ;;  %v2336_v48 = vadd.f32 %v2175_v54, %v2198_v4  ;;  %v286_v54 = vmax.f32 %v2331_v25, 0.0  ;;  %v1482_v53 = vpack.c.bf16 %v466_v40, %v463_v39  ;;  %v474_v8 = vld [vmem:[%s2656_s3 + $0x570] sm:$0xff]  ;;  %v480_v13 = vld [vmem:[%s2656_s3 + $0x5a0] sm:$0xff]  ;;  %v483_v15 = vld [vmem:[%s2656_s3 + $0x5b8] sm:$0xff] }
  0xf4   :  { %1457 = vmatpush1.bf16.msra.mxu0 %v1456_v30  ;;  %1553 = vmatpush3.bf16.msra.mxu1 %v1552_v31  ;;  %v1474_v30 = vpack.c.bf16 %v454_v27, %v451_v23  ;;  %v450_v31 = vld [vmem:[%s2656_s3 + $0x4b0] sm:$0xff]  ;;  %v290_v14 = vmax.f32 %v2355_v33, 0.0  ;;  %v489_v23 = vld [vmem:[%s2656_s3 + $0x5e8] sm:$0xff]  ;;  %v897_v32 = vld [vmem:[%s2658_s5 + $0x18] sm:$0xff] }
  0xf5   :  { %1459 = vmatprep.subr.bf16.mxu0 %v1458_v34  ;;  %1555 = vmatprep.subr.bf16.mxu1 %v1554_v35  ;;  %v1476_v34 = vpack.c.bf16 %v453_v20, %v450_v31  ;;  %v291_v35 = vmax.f32 %v2336_v48, 0.0  ;;  %v486_v62 = vld [vmem:[%s2656_s3 + $0x5d0] sm:$0xff]  ;;  %v911_v16 = vld [vmem:[%s2658_s5 + $0x88] sm:$0xff]  ;;  %v914_v49 = vld [vmem:[%s2658_s5 + $0xa0] sm:$0xff] }
  0xf6   :  { %853 = vmatprep.mubr.f32.mxu1 %v283_v43  ;;  %668 = vmatprep.mubr.f32.mxu0 %v283_v43  ;;  %v1480_v43 = vpack.c.bf16 %v459_v41, %v456_v38  ;;  %v1500_v27 = vpack.c.bf16 %v489_v23, %v486_v62  ;;  %v895_v25 = vld [vmem:[%s2658_s5 + $0x8] sm:$0xff]  ;;  %v912_v48 = vld [vmem:[%s2658_s5 + $0x90] sm:$0xff]  ;;  %v917_v38 = vld [vmem:[%s2658_s5 + $0xb8] sm:$0xff] }
  0xf7   :  { %v896_v31 = vld [vmem:[%s2658_s5 + $0x10] sm:$0xff]  ;;  %v918_v42 = vld [vmem:[%s2658_s5 + $0xc0] sm:$0xff] }
  0xf8   :  { %1461 = vmatpush1.bf16.msra.mxu0 %v1460_v51  ;;  %1557 = vmatpush3.bf16.msra.mxu1 %v1556_v52  ;;  %v295_v51 = vmax.f32 %v2362_v36, 0.0  ;;  %v278_v52 = vadd.f32 %v2240_v6, %v2198_v4  ;;  %v276_v4 = vadd.f32 %v2232_v29, %v2288_v1  ;;  %v1484_v6 = vpack.c.bf16 %v465_v7, %v462_v55  ;;  %v478_v29 = vld [vmem:[%s2656_s3 + $0x590] sm:$0xff]  ;;  %v899_v36 = vld [vmem:[%s2658_s5 + $0x28] sm:$0xff] }
  0xf9   :  { %1463 = vmatprep.subr.bf16.mxu0 %v1462_v56  ;;  %1559 = vmatprep.subr.bf16.mxu1 %v1558_v57  ;;  %v469_v56 = vld [vmem:[%s2656_s3 + $0x548] sm:$0xff]  ;;  %v472_v57 = vld [vmem:[%s2656_s3 + $0x560] sm:$0xff]  ;;  %v1572_v33 = vpack.c.bf16 %v897_v32, %v896_v31  ;;  %v900_v40 = vld [vmem:[%s2658_s5 + $0x30] sm:$0xff] }
  0xfa   :  { %v299_v59 = vmax.f32 %v278_v52, 0.0  ;;  %v1486_v60 = vpack.c.bf16 %v472_v57, %v469_v56  ;;  %v298_v1 = vmax.f32 %v276_v4, 0.0  ;;  %v903_v55 = vld [vmem:[%s2658_s5 + $0x48] sm:$0xff]  ;;  %v920_v7 = vld [vmem:[%s2658_s5 + $0xd0] sm:$0xff]  ;;  %v921_v56 = vld [vmem:[%s2658_s5 + $0xd8] sm:$0xff] }
  0xfb   :  { %v904_v4 = vld [vmem:[%s2658_s5 + $0x50] sm:$0xff] }
  0xfc   :  { %1465 = vmatpush1.bf16.msra.mxu0 %v1464_v2  ;;  %1561 = vmatpush3.bf16.msra.mxu1 %v1560_v5  ;;  %v1488_v2 = vpack.c.bf16 %v471_v63, %v468_v61  ;;  %v1490_v5 = vpack.c.bf16 %v478_v29, %v475_v0  ;;  %v906_v0 = vld [vmem:[%s2658_s5 + $0x60] sm:$0xff]  ;;  %v907_v29 = vld [vmem:[%s2658_s5 + $0x68] sm:$0xff] }
  0xfd   :  { %1467 = vmatprep.subr.bf16.mxu0 %v1466_v9  ;;  %1563 = vmatprep.subr.bf16.mxu1 %v1562_v10  ;;  %v477_v9 = vld [vmem:[%s2656_s3 + $0x588] sm:$0xff] }
  0xfe   :  { %v481_v10 = vld [vmem:[%s2656_s3 + $0x5a8] sm:$0xff]  ;;  %v1492_v46 = vpack.c.bf16 %v477_v9, %v474_v8  ;;  %v908_v9 = vld [vmem:[%s2658_s5 + $0x70] sm:$0xff] }
  0xff   :  { %v1494_v12 = vpack.c.bf16 %v484_v11, %v481_v10  ;;  %v909_v10 = vld [vmem:[%s2658_s5 + $0x78] sm:$0xff] }
 0x100   :  { %1469 = vmatpush1.bf16.msra.mxu0 %v1468_v17  ;;  %1565 = vmatpush3.bf16.msra.mxu1 %v1564_v18  ;;  %v487_v17 = vld [vmem:[%s2656_s3 + $0x5d8] sm:$0xff]  ;;  %v490_v18 = vld [vmem:[%s2656_s3 + $0x5f0] sm:$0xff]  ;;  %v1596_v11 = vpack.c.bf16 %v909_v10, %v908_v9 }
 0x101   :  { %1471 = vmatprep.subr.bf16.mxu0 %v1470_v21  ;;  %v1496_v21 = vpack.c.bf16 %v483_v15, %v480_v13  ;;  %v1498_v22 = vpack.c.bf16 %v490_v18, %v487_v17 }
 0x103   :  { %854 = vmatmul.mubr.f32.vlgmr.msra.gmra.mrb[20].mxu1 %v282_v24 }
 0x104   :  { %1473 = vmatpush1.bf16.msra.mxu0 %v1472_v26  ;;  %858 = vmatprep.mubr.f32.mxu1 %v287_v28  ;;  %v910_v26 = vld [vmem:[%s2658_s5 + $0x80] sm:$0xff] }
 0x105   :  { %1475 = vmatprep.subr.bf16.mxu0 %v1474_v30  ;;  %v1566_v19 = vpack.c.bf16 %v911_v16, %v910_v26  ;;  %v913_v30 = vld [vmem:[%s2658_s5 + $0x98] sm:$0xff] }
 0x106   :  { %v1570_v20 = vpack.c.bf16 %v913_v30, %v912_v48 }
 0x107   :  { %859 = vmatmul.mubr.f32.gmra.mrb[22].mxu1 %v286_v54  ;;  %1567 = vmatprep.subr.bf16.mxu1 %v1566_v19 }
 0x108   :  { %1477 = vmatpush1.bf16.msra.mxu0 %v1476_v34  ;;  %863 = vmatprep.mubr.f32.mxu1 %v291_v35 }
 0x109   :  { %1479 = vmatprep.subr.bf16.mxu0 %v1478_v37  ;;  %v916_v37 = vld [vmem:[%s2658_s5 + $0xb0] sm:$0xff] }
 0x10a   :  { %v1578_v39 = vpack.c.bf16 %v917_v38, %v916_v37 }
 0x10b   :  { %864 = vmatmul.mubr.f32.gmra.mrb[24].mxu1 %v290_v14 }
 0x10c   :  { %1481 = vmatpush1.bf16.msra.mxu0 %v1480_v43  ;;  %868 = vmatprep.mubr.f32.mxu1 %v295_v51  ;;  %v919_v43 = vld [vmem:[%s2658_s5 + $0xc8] sm:$0xff] }
 0x10d   :  { %1483 = vmatprep.subr.bf16.mxu0 %v1482_v53  ;;  %v1582_v52 = vpack.c.bf16 %v919_v43, %v918_v42  ;;  %v902_v53 = vld [vmem:[%s2658_s5 + $0x40] sm:$0xff] }
 0x10e   :  { %v1584_v57 = vpack.c.bf16 %v903_v55, %v902_v53 }
 0x10f   :  { %869 = vmatmul.mubr.f32.gmra.mrb[26].mxu1 %v294_v58 }
 0x110   :  { %1485 = vmatpush1.bf16.msra.mxu0 %v1484_v6  ;;  %873 = vmatprep.mubr.f32.mxu1 %v299_v59  ;;  %v905_v6 = vld [vmem:[%s2658_s5 + $0x58] sm:$0xff] }
 0x111   :  { %1487 = vmatprep.subr.bf16.mxu0 %v1486_v60  ;;  %v923_v60 = vld [vmem:[%s2658_s5 + $0xe8] sm:$0xff]  ;;  %v1588_v61 = vpack.c.bf16 %v905_v6, %v904_v4 }
 0x113   :  { %874 = vmatmul.mubr.f32.gmra.mrb[28].mxu1 %v298_v1 }
 0x114   :  { %1489 = vmatpush1.bf16.msra.mxu0 %v1488_v2  ;;  %v924_v2 = vld [vmem:[%s2658_s5 + $0xf0] sm:$0xff] }
 0x115   :  { %1491 = vmatprep.subr.bf16.mxu0 %v1490_v5  ;;  %v925_v5 = vld [vmem:[%s2658_s5 + $0xf8] sm:$0xff] }
 0x116   :  { %v1594_v8 = vpack.c.bf16 %v925_v5, %v924_v2 }
 0x118   :  { %1493 = vmatpush1.bf16.msra.mxu0 %v1492_v46  ;;  %v1648_v46 = vmov 0.0|0.0  }
 0x119   :  { %1495 = vmatprep.subr.bf16.mxu0 %v1494_v12 }
 0x11c   :  { %1497 = vmatpush1.bf16.msra.mxu0 %v1496_v21 }
 0x11d   :  { %1499 = vmatprep.subr.bf16.mxu0 %v1498_v22 }
 0x120   :  { %1501 = vmatpush1.bf16.msra.mxu0 %v1500_v27 }
 0x123   :  { %669 = vmatmul.mubr.f32.vlgmr.msra.gmra.mrb[10].mxu0 %v282_v24  ;;  %v894_v24 = vld [vmem:[%s2658_s5] sm:$0xff] }
 0x124   :  { %674 = vmatprep.mubr.f32.mxu0 %v287_v28  ;;  %v1568_v28 = vpack.c.bf16 %v895_v25, %v894_v24 }
 0x126   :  { %1569 = vmatpush3.bf16.msra.mxu1 %v1568_v28  ;;  %v492_v28 = vld [vmem:[%s2659_s4] sm:$0x7] }
 0x127   :  { %675 = vmatmul.mubr.f32.gmra.mrb[12].mxu0 %v286_v54  ;;  %v915_v54 = vld [vmem:[%s2658_s5 + $0xa8] sm:$0xff]  ;;  %1571 = vmatprep.subr.bf16.mxu1 %v1570_v20  ;;  %v505_v48 = vrot.slane %v492_v28, %v51_v50 }
 0x128   :  { %680 = vmatprep.mubr.f32.mxu0 %v291_v35  ;;  %v1574_v34 = vpack.c.bf16 %v915_v54, %v914_v49  ;;  %v898_v35 = vld [vmem:[%s2658_s5 + $0x20] sm:$0xff] }
 0x129   :  { %v1576_v41 = vpack.c.bf16 %v899_v36, %v898_v35 }
 0x12a   :  { %1573 = vmatpush3.bf16.msra.mxu1 %v1572_v33 }
 0x12b   :  { %681 = vmatmul.mubr.f32.gmra.mrb[14].mxu0 %v290_v14  ;;  %1575 = vmatprep.subr.bf16.mxu1 %v1574_v34  ;;  %v901_v14 = vld [vmem:[%s2658_s5 + $0x38] sm:$0xff] }
 0x12c   :  { %686 = vmatprep.mubr.f32.mxu0 %v295_v51  ;;  %v1580_v51 = vpack.c.bf16 %v901_v14, %v900_v40 }
 0x12e   :  { %1577 = vmatpush3.bf16.msra.mxu1 %v1576_v41 }
 0x12f   :  { %687 = vmatmul.mubr.f32.gmra.mrb[16].mxu0 %v294_v58  ;;  %1579 = vmatprep.subr.bf16.mxu1 %v1578_v39  ;;  %v1586_v58 = vpack.c.bf16 %v921_v56, %v920_v7 }
 0x130   :  { %692 = vmatprep.mubr.f32.mxu0 %v299_v59  ;;  %v922_v59 = vld [vmem:[%s2658_s5 + $0xe0] sm:$0xff] }
 0x131   :  { %v1590_v63 = vpack.c.bf16 %v923_v60, %v922_v59  ;;  %v926_v60 = vld [vmem:[%s2658_s5 + $0x100] sm:$0xff] }
 0x132   :  { %1581 = vmatpush3.bf16.msra.mxu1 %v1580_v51 }
 0x133   :  { %693 = vmatmul.mubr.f32.gmra.mrb[18].mxu0 %v298_v1  ;;  %1583 = vmatprep.subr.bf16.mxu1 %v1582_v52  ;;  %v1592_v1 = vpack.c.bf16 %v907_v29, %v906_v0 }
 0x136   :  { %1585 = vmatpush3.bf16.msra.mxu1 %v1584_v57  ;;  %v497_v57 = vrot.slane %v492_v28, %v43_v45 }
 0x137   :  { %1587 = vmatprep.subr.bf16.mxu1 %v1586_v58  ;;  %v501_v58 = vrot.slane %v492_v28, %v47_v47  ;;  %v929_v47 = vld [vmem:[%s2658_s5 + $0x118] sm:$0xff] }
 0x13a   :  { %1589 = vmatpush3.bf16.msra.mxu1 %v1588_v61  ;;  %v927_v61 = vld [vmem:[%s2658_s5 + $0x108] sm:$0xff] }
 0x13b   :  { %1591 = vmatprep.subr.bf16.mxu1 %v1590_v63 }
 0x13e   :  { %1593 = vmatpush3.bf16.msra.mxu1 %v1592_v1  ;;  %v1599_v1 = vpack.c.bf16 %v927_v61, %v926_v60 }
 0x13f   :  { %1595 = vmatprep.subr.bf16.mxu1 %v1594_v8 }
 0x142   :  { %1597 = vmatpush3.bf16.msra.mxu1 %v1596_v11  ;;  %v1602_v11 = vpack.c.bf16 %v929_v47, %v928_v44 }
 0x143   :  { %1598 = vmatprep.subr.bf16.mxu1 %v1648_v46 }
 0x1b6   :  { %v1185_v12 = vpop.f32.mrb[10].mxu1 }
 0x1b7   :  { %v1186_v13 = vpop.f32.mrb[11].mxu1 }
 0x1b8   :  { %v1187_v15 = vadd.f32 %v1186_v13, %v1185_v12 }
 0x1ba   :  { %v1188_v17 = vpop.f32.mrb[12].mxu1  ;;  %v766_v20 = vadd.f32 %v1187_v15, %v505_v48 }
 0x1bb   :  { %v1189_v18 = vpop.f32.mrb[13].mxu1 }
 0x1bc   :  { %v1190_v21 = vadd.f32 %v1189_v18, %v1188_v17  ;;  %v930_v17 = vld [vmem:[%s2658_s5 + $0x120] sm:$0xff]  ;;  %v931_v18 = vld [vmem:[%s2658_s5 + $0x128] sm:$0xff] }
 0x1be   :  { %v1191_v22 = vpop.f32.mrb[14].mxu1  ;;  %v771_v49 = vadd.f32 %v1190_v21, %v505_v48 }
 0x1bf   :  { %v1192_v62 = vpop.f32.mrb[15].mxu1 }
 0x1c0   :  { %v1193_v23 = vadd.f32 %v1192_v62, %v1191_v22 }
 0x1c2   :  { %v1194_v27 = vpop.f32.mrb[16].mxu1  ;;  %v776_v36 = vadd.f32 %v1193_v23, %v505_v48  ;;  %v1605_v23 = vpack.c.bf16 %v931_v18, %v930_v17 }
 0x1c3   :  { %v1195_v26 = vpop.f32.mrb[17].mxu1 }
 0x1c4   :  { %v1196_v16 = vadd.f32 %v1195_v26, %v1194_v27 }
 0x1c6   :  { %v1197_v19 = vpop.f32.mrb[18].mxu1  ;;  %v781_v40 = vadd.f32 %v1196_v16, %v505_v48 }
 0x1c7   :  { %v1198_v24 = vpop.f32.mrb[19].mxu1 }
 0x1c8   :  { %v1199_v25 = vadd.f32 %v1198_v24, %v1197_v19  ;;  %v932_v19 = vld [vmem:[%s2658_s5 + $0x130] sm:$0xff]  ;;  %v933_v24 = vld [vmem:[%s2658_s5 + $0x138] sm:$0xff] }
 0x1ca   :  { %v786_v51 = vadd.f32 %v1199_v25, %v505_v48 }
 0x1d6   :  { %v1232_v30 = vpop.f32.mrb[20].mxu1 }
 0x1d7   :  { %v1233_v31 = vpop.f32.mrb[21].mxu1 }
 0x1d8   :  { %v1234_v32 = vadd.f32 %v1233_v31, %v1232_v30  ;;  %v1608_v30 = vpack.c.bf16 %v933_v24, %v932_v19 }
 0x1da   :  { %v2552_v54 = vadd.f32 %v1234_v32, %v766_v20  ;;  %v1235_v33 = vpop.f32.mrb[22].mxu1 }
 0x1db   :  { %v1236_v34 = vpop.f32.mrb[23].mxu1 }
 0x1dc   :  { %v1237_v35 = vadd.f32 %v1236_v34, %v1235_v33  ;;  %v935_v33 = vld [vmem:[%s2658_s5 + $0x148] sm:$0xff] }
 0x1de   :  { %v2554_v37 = vadd.f32 %v1237_v35, %v771_v49  ;;  %v1238_v38 = vpop.f32.mrb[24].mxu1  ;;  %v934_v49 = vld [vmem:[%s2658_s5 + $0x140] sm:$0xff] }
 0x1df   :  { %v1239_v41 = vpop.f32.mrb[25].mxu1 }
 0x1e0   :  { %v1240_v39 = vadd.f32 %v1239_v41, %v1238_v38  ;;  %v936_v41 = vld [vmem:[%s2658_s5 + $0x150] sm:$0xff] }
 0x1e2   :  { %v2556_v14 = vadd.f32 %v1240_v39, %v776_v36  ;;  %v1241_v50 = vpop.f32.mrb[26].mxu1  ;;  %v1611_v36 = vpack.c.bf16 %v935_v33, %v934_v49  ;;  %v937_v39 = vld [vmem:[%s2658_s5 + $0x158] sm:$0xff] }
 0x1e3   :  { %v1242_v42 = vpop.f32.mrb[27].mxu1 }
 0x1e4   :  { %v1243_v43 = vadd.f32 %v1242_v42, %v1241_v50  ;;  %v938_v50 = vld [vmem:[%s2658_s5 + $0x160] sm:$0xff]  ;;  %v939_v42 = vld [vmem:[%s2658_s5 + $0x168] sm:$0xff] }
 0x1e6   :  { %v2558_v52 = vadd.f32 %v1243_v43, %v781_v40  ;;  %v1244_v53 = vpop.f32.mrb[28].mxu1  ;;  %v1614_v40 = vpack.c.bf16 %v937_v39, %v936_v41  ;;  %v1617_v43 = vpack.c.bf16 %v939_v42, %v938_v50 }
 0x1e7   :  { %v1245_v55 = vpop.f32.mrb[29].mxu1 }
 0x1e8   :  { %v1246_v7 = vadd.f32 %v1245_v55, %v1244_v53  ;;  %v941_v53 = vld [vmem:[%s2658_s5 + $0x178] sm:$0xff] }
 0x1ea   :  { %v2560_v56 = vadd.f32 %v1246_v7, %v786_v51  ;;  %v940_v51 = vld [vmem:[%s2658_s5 + $0x170] sm:$0xff]  ;;  %v881_v7 = vmax.f32 %v2552_v54, 0.0 }
 0x1eb   :  { %v1620_v55 = vpack.c.bf16 %v941_v53, %v940_v51 }
 0x1ec   :  { %v893_v54 = vmax.f32 %v2560_v56, 0.0 }
 0x1f6   :  { %v670_v4 = vpop.f32.mrb[10].mxu0 }
 0x1f7   :  { %v1622_v6 = vadd.f32 %v670_v4, %v497_v57  ;;  %v672_v59 = vpop.f32.mrb[11].mxu0 }
 0x1f8   :  { %v1623_v63 = vadd.f32 %v672_v59, %v501_v58 }
 0x1f9   :  { %v879_v2 = vmax.f32 %v1622_v6, 0.0 }
 0x1fa   :  { %v880_v0 = vmax.f32 %v1623_v63, 0.0  ;;  %v676_v29 = vpop.f32.mrb[12].mxu0 }
 0x1fb   :  { %v1624_v45 = vadd.f32 %v676_v29, %v497_v57  ;;  %v678_v5 = vpop.f32.mrb[13].mxu0 }
 0x1fc   :  { %v1625_v8 = vadd.f32 %v678_v5, %v501_v58  ;;  %1013 = vmatprep.mubr.f32.mxu1 %v880_v0 }
 0x1fd   :  { %1014 = vmatmul.mubr.f32.vlgmr.msra.gmra.mrb[30].mxu1 %v879_v2  ;;  %v882_v12 = vmax.f32 %v1624_v45, 0.0 }
 0x1fe   :  { %v883_v9 = vmax.f32 %v1625_v8, 0.0  ;;  %1600 = vmatpush3.bf16.msra.mxu1 %v1599_v1  ;;  %v682_v10 = vpop.f32.mrb[14].mxu0 }
 0x1ff   :  { %v1626_v13 = vadd.f32 %v682_v10, %v497_v57  ;;  %v684_v15 = vpop.f32.mrb[15].mxu0  ;;  %1601 = vmatprep.subr.bf16.mxu1 %v1648_v46 }
 0x200   :  { %v1627_v21 = vadd.f32 %v684_v15, %v501_v58  ;;  %1018 = vmatprep.mubr.f32.mxu1 %v883_v9 }
 0x201   :  { %1019 = vmatmul.mubr.f32.gmra.mrb[32].mxu1 %v882_v12  ;;  %v885_v27 = vmax.f32 %v1626_v13, 0.0 }
 0x202   :  { %v886_v22 = vmax.f32 %v1627_v21, 0.0  ;;  %1603 = vmatpush3.bf16.msra.mxu1 %v1602_v11  ;;  %v688_v62 = vpop.f32.mrb[16].mxu0 }
 0x203   :  { %v1628_v26 = vadd.f32 %v688_v62, %v497_v57  ;;  %v690_v16 = vpop.f32.mrb[17].mxu0  ;;  %1604 = vmatprep.subr.bf16.mxu1 %v1648_v46 }
 0x204   :  { %v1629_v25 = vadd.f32 %v690_v16, %v501_v58  ;;  %1023 = vmatprep.mubr.f32.mxu1 %v886_v22 }
 0x205   :  { %1024 = vmatmul.mubr.f32.gmra.mrb[34].mxu1 %v885_v27  ;;  %v888_v31 = vmax.f32 %v1628_v26, 0.0 }
 0x206   :  { %v889_v28 = vmax.f32 %v1629_v25, 0.0  ;;  %1606 = vmatpush3.bf16.msra.mxu1 %v1605_v23  ;;  %v694_v48 = vpop.f32.mrb[18].mxu0 }
 0x207   :  { %v1630_v20 = vadd.f32 %v694_v48, %v497_v57  ;;  %v696_v32 = vpop.f32.mrb[19].mxu0  ;;  %1607 = vmatprep.subr.bf16.mxu1 %v1648_v46  ;;  %v884_v57 = vmax.f32 %v2554_v37, 0.0 }
 0x208   :  { %v1631_v34 = vadd.f32 %v696_v32, %v501_v58  ;;  %1028 = vmatprep.mubr.f32.mxu1 %v889_v28  ;;  %v887_v58 = vmax.f32 %v2556_v14, 0.0 }
 0x209   :  { %1029 = vmatmul.mubr.f32.gmra.mrb[36].mxu1 %v888_v31  ;;  %v891_v38 = vmax.f32 %v1630_v20, 0.0 }
 0x20a   :  { %v892_v35 = vmax.f32 %v1631_v34, 0.0  ;;  %1609 = vmatpush3.bf16.msra.mxu1 %v1608_v30 }
 0x20b   :  { %1610 = vmatprep.subr.bf16.mxu1 %v1648_v46 }
 0x20c   :  { %1033 = vmatprep.mubr.f32.mxu1 %v892_v35 }
 0x20d   :  { %1034 = vmatmul.mubr.f32.gmra.mrb[38].mxu1 %v891_v38 }
 0x20e   :  { %1612 = vmatpush3.bf16.msra.mxu1 %v1611_v36  ;;  %1347 = vmatprep.mubr.msk.f32.mxu1 %vm1649_vm4, %v1647_v3 }
 0x20f   :  { %1613 = vmatprep.subr.bf16.mxu1 %v1648_v46 }
 0x212   :  { %1615 = vmatpush3.bf16.msra.mxu1 %v1614_v40 }
 0x213   :  { %1616 = vmatprep.subr.bf16.mxu1 %v1648_v46 }
 0x216   :  { %1618 = vmatpush3.bf16.msra.mxu1 %v1617_v43 }
 0x217   :  { %1619 = vmatprep.subr.bf16.mxu1 %v1648_v46  ;;  %v890_v46 = vmax.f32 %v2558_v52, 0.0 }
 0x21a   :  { %1621 = vmatpush3.bf16.msra.mxu1 %v1620_v55 }
 0x21d   :  { %1348 = vmatmul.mubr.f32.vlgmr.msra.gmra.mrb[40].mxu1 %v881_v7 }
 0x21e   :  { %1350 = vmatprep.mubr.msk.f32.mxu1 %vm1649_vm4, %v1647_v3 }
 0x221   :  { %1351 = vmatmul.mubr.f32.gmra.mrb[42].mxu1 %v884_v57 }
 0x222   :  { %1353 = vmatprep.mubr.msk.f32.mxu1 %vm1649_vm4, %v1647_v3 }
 0x225   :  { %1354 = vmatmul.mubr.f32.gmra.mrb[44].mxu1 %v887_v58 }
 0x226   :  { %1356 = vmatprep.mubr.msk.f32.mxu1 %vm1649_vm4, %v1647_v3 }
 0x229   :  { %1357 = vmatmul.mubr.f32.gmra.mrb[46].mxu1 %v890_v46 }
 0x22a   :  { %1359 = vmatprep.mubr.msk.f32.mxu1 %vm1649_vm4, %v1647_v3  ;;  %v1152_v3 = vld [vmem:[%s2660_s6] ss:$0 sm:$0xff] }
 0x22d   :  { %1360 = vmatmul.mubr.f32.gmra.mrb[48].mxu1 %v893_v54 }
 0x2d0   :  { %v1279_v37 = vpop.f32.mrb[30].mxu1 }
 0x2d1   :  { %v1280_v4 = vpop.f32.mrb[31].mxu1 }
 0x2d2   :  { %v1281_v6 = vadd.f32 %v1280_v4, %v1279_v37 }
 0x2d4   :  { %v1282_v59 = vpop.f32.mrb[32].mxu1  ;;  %v1016_v56 = vadd.f32 %v1281_v6, %v1152_v3 }
 0x2d5   :  { %v1283_v60 = vpop.f32.mrb[33].mxu1 }
 0x2d6   :  { %v1284_v61 = vadd.f32 %v1283_v60, %v1282_v59 }
 0x2d8   :  { %v1285_v14 = vpop.f32.mrb[34].mxu1  ;;  %v1021_v9 = vadd.f32 %v1284_v61, %v1152_v3 }
 0x2d9   :  { %v1286_v63 = vpop.f32.mrb[35].mxu1 }
 0x2da   :  { %v1287_v0 = vadd.f32 %v1286_v63, %v1285_v14 }
 0x2dc   :  { %v1288_v29 = vpop.f32.mrb[36].mxu1  ;;  %v1026_v13 = vadd.f32 %v1287_v0, %v1152_v3 }
 0x2dd   :  { %v1289_v1 = vpop.f32.mrb[37].mxu1 }
 0x2de   :  { %v1290_v2 = vadd.f32 %v1289_v1, %v1288_v29 }
 0x2e0   :  { %v1291_v52 = vpop.f32.mrb[38].mxu1  ;;  %v1031_v21 = vadd.f32 %v1290_v2, %v1152_v3 }
 0x2e1   :  { %v1292_v45 = vpop.f32.mrb[39].mxu1 }
 0x2e2   :  { %v1293_v5 = vadd.f32 %v1292_v45, %v1291_v52 }
 0x2e4   :  { %v1036_v27 = vadd.f32 %v1293_v5, %v1152_v3 }
 0x2f0   :  { %v1105_v44 = vpop.f32.mrb[40].mxu1 }
 0x2f1   :  { %v1106_v47 = vadd.f32 %v1105_v44, %v1016_v56  ;;  %v1349_v8 = vpop.f32.mrb[41].mxu1 }
 0x2f3   :  { %1129 = vst [vmem:[%s2661_s7] sm:$0xff] %v1106_v47 }
 0x2f4   :  { %v1110_v10 = vpop.f32.mrb[42].mxu1 }
 0x2f5   :  { %v1111_v11 = vadd.f32 %v1110_v10, %v1021_v9  ;;  %v1352_v12 = vpop.f32.mrb[43].mxu1 }
 0x2f7   :  { %1130 = vst [vmem:[%s2661_s7 + $0x8] sm:$0xff] %v1111_v11 }
 0x2f8   :  { %v1115_v15 = vpop.f32.mrb[44].mxu1 }
 0x2f9   :  { %v1116_v17 = vadd.f32 %v1115_v15, %v1026_v13  ;;  %v1355_v18 = vpop.f32.mrb[45].mxu1 }
 0x2fb   :  { %1131 = vst [vmem:[%s2661_s7 + $0x10] sm:$0xff] %v1116_v17 }
 0x2fc   :  { %v1120_v22 = vpop.f32.mrb[46].mxu1 }
 0x2fd   :  { %v1121_v62 = vadd.f32 %v1120_v22, %v1031_v21  ;;  %v1358_v23 = vpop.f32.mrb[47].mxu1 }
 0x2ff   :  { %1132 = vst [vmem:[%s2661_s7 + $0x18] sm:$0xff] %v1121_v62 }
 0x300   :  { %v1125_v26 = vpop.f32.mrb[48].mxu1 }
 0x301   :  { %v1126_v16 = vadd.f32 %v1125_v26, %v1036_v27  ;;  %v1361_v19 = vpop.f32.mrb[49].mxu1 }
 0x303   :  { %1133 = vst [vmem:[%s2661_s7 + $0x20] sm:$0xff] %v1126_v16 }

</bundles_post_ra>
